<compile_context>
chip_gen: v7x
topology: tpu7x:2x2x1
jax: 0.10.0
libtpu: 0.0.40
codegen_flags: <defaults>
</compile_context>

<pallas_src>
import functools

import jax
import jax.numpy as jnp
from jax.experimental import pallas as pl
from jax.experimental.pallas import tpu as pltpu


def se_kernel(x_ref, w1_ref, b1_ref, w2t_ref, b2t_ref, out_ref, *, inv_hw):
    # x_ref: (B, C, HW) f32, fully resident in VMEM.
    x = x_ref[...]                                             # (B, C, HW)

    # Squeeze: global average pool over HW (lane reduce), kept sublane-major.
    pooled = jnp.sum(x, axis=-1, keepdims=True) * inv_hw       # (B, C, 1)

    # Excitation FC1 (C -> hidden) on VPU/XLU: broadcast-mul + reduce over C.
    # pooled (B,C,1) * w1 (1,C,hidden) -> (B,C,hidden); sum over C (sublanes).
    h = jnp.sum(pooled * w1_ref[...][None, :, :], axis=1)      # (B, hidden)
    h = jnp.maximum(h + b1_ref[...], 0.0)                      # ReLU

    # Excitation FC2 (hidden -> C), keeping C on sublanes:
    # w2t (1,C,hidden) * h (B,1,hidden) -> (B,C,hidden); reduce over hidden.
    z = jnp.sum(w2t_ref[...][None, :, :] * h[:, None, :],
                axis=-1, keepdims=True)                        # (B, C, 1)
    s = jax.nn.sigmoid(z + b2t_ref[...][None, :, :])           # (B, C, 1)

    # Scale: per-(b,c) scalar broadcast over the lane (HW) dim -> pure VPU.
    out_ref[...] = x * s


@jax.jit
def se_block(x, w1, b1, w2, b2):
    """x: (B, C, H, W) f32.
    w1: (C, hidden), b1: (hidden,), w2: (hidden, C), b2: (C,)
    (Linear weights stored as (in_features, out_features))."""
    B, C, H, W = x.shape
    HW = H * W
    hidden = w1.shape[1]

    x3 = x.reshape(B, C, HW)        # contiguous -> free reshape
    w2t = w2.T                      # (C, hidden): keeps C on sublanes in FC2
    b1r = b1.reshape(1, hidden)
    b2r = b2.reshape(C, 1)

    vmem = pl.BlockSpec(memory_space=pltpu.MemorySpace.VMEM)
    kernel = functools.partial(se_kernel, inv_hw=1.0 / HW)

    out3 = pl.pallas_call(
        kernel,
        out_shape=jax.ShapeDtypeStruct((B, C, HW), x.dtype),
        in_specs=[vmem] * 5,
        out_specs=vmem,
    )(x3, w1, b1r, w2t, b2r)
    return out3.reshape(B, C, H, W)


def reference(x, w1, b1, w2, b2):
    pooled = jnp.mean(x, axis=(2, 3))                          # (B, C)
    h = jnp.maximum(pooled @ w1 + b1, 0.0)                     # (B, hidden)
    s = jax.nn.sigmoid(h @ w2 + b2)                            # (B, C)
    return x * s[:, :, None, None]


if __name__ == "__main__":
    # SqueezeAndExcitationBlock(channel_count=48, activation='relu',
    #                           reduction_ratio=24)  -> hidden = 2
    B, C, H, W = 2, 48, 16, 16
    reduction_ratio = 24
    hidden = C // reduction_ratio  # = 2

    key = jax.random.PRNGKey(0)
    kx, k1, k2, k3, k4 = jax.random.split(key, 5)

    x = jax.random.normal(kx, (B, C, H, W), dtype=jnp.float32)
    w1 = jax.random.normal(k1, (C, hidden), dtype=jnp.float32) * 0.1
    b1 = jax.random.normal(k2, (hidden,), dtype=jnp.float32) * 0.1
    w2 = jax.random.normal(k3, (hidden, C), dtype=jnp.float32) * 0.1
    b2 = jax.random.normal(k4, (C,), dtype=jnp.float32) * 0.1

    out = jax.block_until_ready(se_block(x, w1, b1, w2, b2))
    ref = reference(x, w1, b1, w2, b2)

    assert out.shape == (B, C, H, W)
    assert jnp.allclose(out, ref, atol=1e-5, rtol=1e-5)

    print("KERNEL_OK")
</pallas_src>

<mosaic_0001>
module attributes {stable_mosaic.version = 11 : i64} {
  func.func @se_kernel(%arg0: memref<2x48x256xf32, #tpu.memory_space<vmem>>, %arg1: memref<48x2xf32, #tpu.memory_space<vmem>>, %arg2: memref<1x2xf32, #tpu.memory_space<vmem>>, %arg3: memref<48x2xf32, #tpu.memory_space<vmem>>, %arg4: memref<48x1xf32, #tpu.memory_space<vmem>>, %arg5: memref<2x48x256xf32, #tpu.memory_space<vmem>>) attributes {dimension_semantics = [], scalar_prefetch = 0 : i64, scratch_operands = 0 : i64, tpu.core_type = #tpu.core_type<tc>} {
    %c0 = arith.constant 0 : index
    %c0_0 = arith.constant 0 : index
    %c0_1 = arith.constant 0 : index
    %0 = vector.load %arg0[%c0, %c0_0, %c0_1] : memref<2x48x256xf32, #tpu.memory_space<vmem>>, vector<2x48x256xf32>
    %cst = arith.constant dense<0.000000e+00> : vector<2x48xf32>
    %1 = vector.multi_reduction <add>, %0, %cst [2] : vector<2x48x256xf32> to vector<2x48xf32>
    %2 = vector.shape_cast %1 : vector<2x48xf32> to vector<2x48x1xf32>
    %cst_2 = arith.constant 3.906250e-03 : f32
    %3 = vector.broadcast %cst_2 : f32 to vector<2x48x1xf32>
    %4 = arith.mulf %2, %3 : vector<2x48x1xf32>
    %c0_3 = arith.constant 0 : index
    %c0_4 = arith.constant 0 : index
    %5 = vector.load %arg1[%c0_3, %c0_4] : memref<48x2xf32, #tpu.memory_space<vmem>>, vector<48x2xf32>
    %6 = vector.shape_cast %5 : vector<48x2xf32> to vector<1x48x2xf32>
    %7 = vector.broadcast %4 : vector<2x48x1xf32> to vector<2x48x2xf32>
    %8 = vector.broadcast %6 : vector<1x48x2xf32> to vector<2x48x2xf32>
    %9 = arith.mulf %7, %8 : vector<2x48x2xf32>
    %cst_5 = arith.constant dense<0.000000e+00> : vector<2x2xf32>
    %10 = vector.multi_reduction <add>, %9, %cst_5 [1] : vector<2x48x2xf32> to vector<2x2xf32>
    %c0_6 = arith.constant 0 : index
    %c0_7 = arith.constant 0 : index
    %11 = vector.load %arg2[%c0_6, %c0_7] : memref<1x2xf32, #tpu.memory_space<vmem>>, vector<1x2xf32>
    %12 = vector.broadcast %11 : vector<1x2xf32> to vector<2x2xf32>
    %13 = arith.addf %10, %12 : vector<2x2xf32>
    %cst_8 = arith.constant 0.000000e+00 : f32
    %14 = vector.broadcast %cst_8 : f32 to vector<2x2xf32>
    %15 = arith.maximumf %13, %14 : vector<2x2xf32>
    %c0_9 = arith.constant 0 : index
    %c0_10 = arith.constant 0 : index
    %16 = vector.load %arg3[%c0_9, %c0_10] : memref<48x2xf32, #tpu.memory_space<vmem>>, vector<48x2xf32>
    %17 = vector.shape_cast %16 : vector<48x2xf32> to vector<1x48x2xf32>
    %18 = vector.shape_cast %15 : vector<2x2xf32> to vector<2x1x2xf32>
    %19 = vector.broadcast %17 : vector<1x48x2xf32> to vector<2x48x2xf32>
    %20 = vector.broadcast %18 : vector<2x1x2xf32> to vector<2x48x2xf32>
    %21 = arith.mulf %19, %20 : vector<2x48x2xf32>
    %cst_11 = arith.constant dense<0.000000e+00> : vector<2x48xf32>
    %22 = vector.multi_reduction <add>, %21, %cst_11 [2] : vector<2x48x2xf32> to vector<2x48xf32>
    %23 = vector.shape_cast %22 : vector<2x48xf32> to vector<2x48x1xf32>
    %c0_12 = arith.constant 0 : index
    %c0_13 = arith.constant 0 : index
    %24 = vector.load %arg4[%c0_12, %c0_13] : memref<48x1xf32, #tpu.memory_space<vmem>>, vector<48x1xf32>
    %25 = vector.shape_cast %24 : vector<48x1xf32> to vector<1x48x1xf32>
    %26 = vector.broadcast %25 : vector<1x48x1xf32> to vector<2x48x1xf32>
    %27 = arith.addf %23, %26 : vector<2x48x1xf32>
    %28 = arith.negf %27 : vector<2x48x1xf32>
    %29 = math.exp %28 : vector<2x48x1xf32>
    %cst_14 = arith.constant 1.000000e+00 : f32
    %30 = vector.broadcast %cst_14 : f32 to vector<2x48x1xf32>
    %31 = arith.addf %30, %29 : vector<2x48x1xf32>
    %32 = arith.divf %30, %31 : vector<2x48x1xf32>
    %33 = vector.broadcast %32 : vector<2x48x1xf32> to vector<2x48x256xf32>
    %34 = arith.mulf %0, %33 : vector<2x48x256xf32>
    %c0_15 = arith.constant 0 : index
    %c0_16 = arith.constant 0 : index
    %c0_17 = arith.constant 0 : index
    %35 = vector.load %arg5[%c0_15, %c0_16, %c0_17] : memref<2x48x256xf32, #tpu.memory_space<vmem>>, vector<2x48x256xf32>
    tpu.vector_store %arg5[%c0_15, %c0_16, %c0_17], %34 {strides = array<i32>} : memref<2x48x256xf32, #tpu.memory_space<vmem>>, vector<2x48x256xf32>,
    return
  }
}

</mosaic_0001>

<bundles_post_ra>
// kernel: se_block.1
= control target key start
LH: loop header
LB: loop body
LE: loop exit
PB: predicated region body
PF: predicated region fallthrough
CT: control target
= control target key end

     0   :  { %vm110_vm0 = vcmask 15360   ;;  %s836_s0 = inlined_call_operand.vmem [shape: f32[2,48,256], index: 0, kind: input, shape index: {}]   ;;  %s837_s1 = inlined_call_operand.vmem [shape: f32[48,2], index: 1, kind: input, shape index: {}]   ;;  %s838_s2 = inlined_call_operand.vmem [shape: f32[1,2], index: 2, kind: input, shape index: {}]   ;;  %s839_s3 = inlined_call_operand.vmem [shape: f32[48,2], index: 3, kind: input, shape index: {}]   ;;  %s840_s4 = inlined_call_operand.vmem [shape: f32[48,1], index: 4, kind: input, shape index: {}]   ;;  %s841_s5 = inlined_call_operand.vmem [shape: f32[2,48,256], index: 5, kind: output, shape index: {}]  }
   0x1   :  { %v518_v0 = vld [vmem:[%s836_s0] sm:$0xff]  ;;  %v523_v1 = vld [vmem:[%s836_s0 + $0x8] sm:$0xff]  ;;  %v540_v5 = vld [vmem:[%s836_s0 + $0x10] sm:$0xff] }
   0x2   :  { %v528_v2 = vld [vmem:[%s836_s0 + $0x60] sm:$0xff]  ;;  %v44_v3 = vadd.f32 %v523_v1, %v518_v0  ;;  %v535_v4 = vld [vmem:[%s836_s0 + $0x68] sm:$0xff]  ;;  %v545_v6 = vld [vmem:[%s836_s0 + $0x18] sm:$0xff] }
   0x3   :  { %v62_v7 = vadd.f32 %v535_v4, %v528_v2  ;;  %v552_v8 = vld [vmem:[%s836_s0 + $0x70] sm:$0xff]  ;;  %v557_v9 = vld [vmem:[%s836_s0 + $0x78] sm:$0xff]  ;;  %v47_v10 = vadd.f32 %v545_v6, %v540_v5  ;;  %v566_v12 = vld [vmem:[%s836_s0 + $0x20] sm:$0xff] }
   0x4   :  { %45 = vadd.xlane.f32.xlu0 %v44_v3  ;;  %v65_v11 = vadd.f32 %v557_v9, %v552_v8  ;;  %v571_v13 = vld [vmem:[%s836_s0 + $0x28] sm:$0xff]  ;;  %v576_v14 = vld [vmem:[%s836_s0 + $0x80] sm:$0xff]  ;;  %v590_v18 = vld [vmem:[%s836_s0 + $0x30] sm:$0xff] }
   0x5   :  { %63 = vadd.xlane.f32.xlu1 %v62_v7  ;;  %v581_v15 = vld [vmem:[%s836_s0 + $0x88] sm:$0xff]  ;;  %v50_v16 = vadd.f32 %v571_v13, %v566_v12  ;;  %v595_v19 = vld [vmem:[%s836_s0 + $0x38] sm:$0xff]  ;;  %v600_v20 = vld [vmem:[%s836_s0 + $0x90] sm:$0xff] }
   0x6   :  { %v68_v17 = vadd.f32 %v581_v15, %v576_v14  ;;  %v605_v21 = vld [vmem:[%s836_s0 + $0x98] sm:$0xff]  ;;  %v53_v22 = vadd.f32 %v595_v19, %v590_v18  ;;  %v614_v24 = vld [vmem:[%s836_s0 + $0x40] sm:$0xff]  ;;  %v619_v25 = vld [vmem:[%s836_s0 + $0x48] sm:$0xff] }
   0x7   :  { %v71_v23 = vadd.f32 %v605_v21, %v600_v20  ;;  %v624_v26 = vld [vmem:[%s836_s0 + $0xa0] sm:$0xff]  ;;  %v629_v27 = vld [vmem:[%s836_s0 + $0xa8] sm:$0xff]  ;;  %v56_v28 = vadd.f32 %v619_v25, %v614_v24  ;;  %v638_v30 = vld [vmem:[%s836_s0 + $0x50] sm:$0xff] }
   0x8   :  { %48 = vadd.xlane.f32.xlu0 %v47_v10  ;;  %v74_v29 = vadd.f32 %v629_v27, %v624_v26  ;;  %v643_v31 = vld [vmem:[%s836_s0 + $0x58] sm:$0xff]  ;;  %v648_v32 = vld [vmem:[%s836_s0 + $0xb0] sm:$0xff]  ;;  %v92_v39 = vld [vmem:[%s837_s1] sm:$0xff] }
   0x9   :  { %66 = vadd.xlane.f32.xlu1 %v65_v11  ;;  %v653_v33 = vld [vmem:[%s836_s0 + $0xb8] sm:$0xff]  ;;  %v59_v34 = vadd.f32 %v643_v31, %v638_v30  ;;  %v93_v44 = vld [vmem:[%s837_s1 + $0x8] sm:$0xff]  ;;  %v94_v53 = vld [vmem:[%s837_s1 + $0x10] sm:$0xff] }
   0xa   :  { %v77_v35 = vadd.f32 %v653_v33, %v648_v32  ;;  %v95_v58 = vld [vmem:[%s837_s1 + $0x18] sm:$0xff] }
   0xc   :  { %51 = vadd.xlane.f32.xlu0 %v50_v16 }
   0xd   :  { %69 = vadd.xlane.f32.xlu1 %v68_v17 }
  0x10   :  { %54 = vadd.xlane.f32.xlu0 %v53_v22  ;;  %v96_v22 = vld [vmem:[%s837_s1 + $0x20] sm:$0xff] }
  0x11   :  { %72 = vadd.xlane.f32.xlu1 %v71_v23 }
  0x14   :  { %57 = vadd.xlane.f32.xlu0 %v56_v28 }
  0x15   :  { %75 = vadd.xlane.f32.xlu1 %v74_v29 }
  0x18   :  { %60 = vadd.xlane.f32.xlu0 %v59_v34 }
  0x19   :  { %78 = vadd.xlane.f32.xlu1 %v77_v35 }
  0x91   :  { %v46_v36 = vpop.xlane.xlu0 %45 }
  0x92   :  { %v64_v37 = vpop.xlane.xlu1 %63  ;;  %v80_v49 = vmul.f32 0.00390625, %v46_v36 }
  0x93   :  { %v86_v38 = vmul.f32 0.00390625, %v64_v37 }
  0x94   :  { %v98_v60 = vmul.f32 %v92_v39, %v80_v49 }
  0x95   :  { %v104_v40 = vmul.f32 %v92_v39, %v86_v38  ;;  %v49_v41 = vpop.xlane.xlu0 %48 }
  0x96   :  { %v67_v42 = vpop.xlane.xlu1 %66  ;;  %v81_v45 = vmul.f32 0.00390625, %v49_v41  ;;  %v111_v28 = vsel %vm110_vm0, %v98_v60, 0.0 }
  0x97   :  { %v87_v43 = vmul.f32 0.00390625, %v67_v42  ;;  %v128_v46 = vsel %vm110_vm0, %v104_v40, 0.0 }
  0x98   :  { %v99_v55 = vmul.f32 %v93_v44, %v81_v45 }
  0x99   :  { %v105_v47 = vmul.f32 %v93_v44, %v87_v43  ;;  %v52_v48 = vpop.xlane.xlu0 %51  ;;  %v97_v44 = vld [vmem:[%s837_s1 + $0x28] sm:$0xff] }
  0x9a   :  { %v82_v50 = vmul.f32 0.00390625, %v52_v48  ;;  %v70_v51 = vpop.xlane.xlu1 %69  ;;  %v112_v10 = vsel %vm110_vm0, %v99_v55, 0.0 }
  0x9b   :  { %v129_v52 = vsel %vm110_vm0, %v105_v47, 0.0  ;;  %v88_v54 = vmul.f32 0.00390625, %v70_v51  ;;  %v113_v36 = vadd.f32 %v112_v10, %v111_v28 }
  0x9c   :  { %v130_v56 = vadd.f32 %v129_v52, %v128_v46  ;;  %v100_v61 = vmul.f32 %v94_v53, %v82_v50 }
  0x9d   :  { %v106_v57 = vmul.f32 %v94_v53, %v88_v54  ;;  %v55_v59 = vpop.xlane.xlu0 %54 }
  0x9e   :  { %v83_v62 = vmul.f32 0.00390625, %v55_v59  ;;  %v73_v63 = vpop.xlane.xlu1 %72  ;;  %v114_v29 = vsel %vm110_vm0, %v100_v61, 0.0 }
  0x9f   :  { %v131_v3 = vsel %vm110_vm0, %v106_v57, 0.0  ;;  %v89_v7 = vmul.f32 0.00390625, %v73_v63  ;;  %v115_v42 = vadd.f32 %v114_v29, %v113_v36 }
  0xa0   :  { %v132_v11 = vadd.f32 %v131_v3, %v130_v56  ;;  %v101_v16 = vmul.f32 %v95_v58, %v83_v62  ;;  %v162_v3 = vlaneseq }
  0xa1   :  { %v107_v17 = vmul.f32 %v95_v58, %v89_v7  ;;  %v58_v23 = vpop.xlane.xlu0 %57 }
  0xa2   :  { %v84_v34 = vmul.f32 0.00390625, %v58_v23  ;;  %v76_v35 = vpop.xlane.xlu1 %75  ;;  %v116_v39 = vsel %vm110_vm0, %v101_v16, 0.0  ;;  %v420_v23 = vld [vmem:[%s838_s2] ss:$0 sm:$0xff] }
  0xa3   :  { %v133_v37 = vsel %vm110_vm0, %v107_v17, 0.0  ;;  %v90_v38 = vmul.f32 0.00390625, %v76_v35  ;;  %v117_v49 = vadd.f32 %v116_v39, %v115_v42  ;;  %v163_v17 = vshrl.u32 %v162_v3, 7  ;;  %v157_v39 = vld [vmem:[%s839_s3 + $0x8] sm:$0xff]  ;;  %v159_v42 = vld [vmem:[%s839_s3 + $0x18] sm:$0xff] }
  0xa4   :  { %v134_v40 = vadd.f32 %v133_v37, %v132_v11  ;;  %v102_v41 = vmul.f32 %v96_v22, %v84_v34 }
  0xa5   :  { %v108_v43 = vmul.f32 %v96_v22, %v90_v38  ;;  %v61_v45 = vpop.xlane.xlu0 %60  ;;  %v164_v35 = vsub.s32 0, %v163_v17 }
  0xa6   :  { %v118_v46 = vsel %vm110_vm0, %v102_v41, 0.0  ;;  %v85_v47 = vmul.f32 0.00390625, %v61_v45  ;;  %v79_v48 = vpop.xlane.xlu1 %78 }
  0xa7   :  { %v135_v50 = vsel %vm110_vm0, %v108_v43, 0.0  ;;  %v91_v51 = vmul.f32 0.00390625, %v79_v48  ;;  %v119_v54 = vadd.f32 %v118_v46, %v117_v49  ;;  %v158_v43 = vld [vmem:[%s839_s3 + $0x10] sm:$0xff] }
  0xa8   :  { %v136_v52 = vadd.f32 %v135_v50, %v134_v40  ;;  %v103_v53 = vmul.f32 %v97_v44, %v85_v47  ;;  %v156_v40 = vld [vmem:[%s839_s3] sm:$0xff] }
  0xa9   :  { %v109_v55 = vmul.f32 %v97_v44, %v91_v51  ;;  %v161_v51 = vld [vmem:[%s839_s3 + $0x28] sm:$0xff] }
  0xaa   :  { %v120_v56 = vsel %vm110_vm0, %v103_v53, 0.0 }
  0xab   :  { %v121_v57 = vadd.f32 %v120_v56, %v119_v54  ;;  %v137_v58 = vsel %vm110_vm0, %v109_v55, 0.0 }
  0xac   :  { %v138_v59 = vadd.f32 %v137_v58, %v136_v52  ;;  %v160_v52 = vld [vmem:[%s839_s3 + $0x20] sm:$0xff] }
  0xad   :  { %v122_v60 = vrot.slane %v121_v57, 4 }
  0xae   :  { %v139_v61 = vrot.slane %v138_v59, 4 }
  0xaf   :  { %v123_v62 = vadd.f32 %v122_v60, %v121_v57 }
  0xb0   :  { %v140_v63 = vadd.f32 %v139_v61, %v138_v59 }
  0xb1   :  { %v124_v7 = vrot.slane %v123_v62, 2 }
  0xb2   :  { %v141_v10 = vrot.slane %v140_v63, 2 }
  0xb3   :  { %v125_v11 = vadd.f32 %v124_v7, %v123_v62 }
  0xb4   :  { %v142_v16 = vadd.f32 %v141_v10, %v140_v63 }
  0xb5   :  { %v126_v22 = vrot.slane %v125_v11, 1 }
  0xb6   :  { %v143_v28 = vrot.slane %v142_v16, 1 }
  0xb7   :  { %v127_v29 = vadd.f32 %v126_v22, %v125_v11 }
  0xb8   :  { %v144_v34 = vadd.f32 %v143_v28, %v142_v16  ;;  %v484_v28 = vmov 0  }
  0xb9   :  { %v152_v36 = vadd.f32 %v420_v23, %v127_v29  ;;  %435 = vset.pattern.permute.xlu1 %v484_v28  ;;  %434 = vset.pattern.permute.xlu0 %v484_v28  ;;  %v219_v29 = vld [vmem:[%s840_s4 + $0x8] sm:$0xff] }
  0xba   :  { %v153_v38 = vadd.f32 %v420_v23, %v144_v34  ;;  %v218_v34 = vld [vmem:[%s840_s4] sm:$0xff] }
  0xbb   :  { %v154_v37 = vmax.f32 %v152_v36, 0.0 }
  0xbc   :  { %v155_v46 = vmax.f32 %v153_v38, 0.0 }
  0xbd   :  { %v165_v41 = vrot.slane %v154_v37, %v164_v35 }
  0xbe   :  { %v169_v53 = vrot.slane %v155_v46, %v164_v35 }
  0xbf   :  { %v171_v44 = vmul.f32 %v165_v41, %v157_v39  ;;  %v170_v45 = vmul.f32 %v165_v41, %v156_v40  ;;  %v173_v49 = vmul.f32 %v165_v41, %v159_v42  ;;  %v172_v50 = vmul.f32 %v165_v41, %v158_v43 }
  0xc0   :  { %v175_v56 = vmul.f32 %v165_v41, %v161_v51  ;;  %v174_v57 = vmul.f32 %v165_v41, %v160_v52  ;;  %v177_v60 = vmul.f32 %v169_v53, %v157_v39  ;;  %v176_v61 = vmul.f32 %v169_v53, %v156_v40  ;;  %v221_v39 = vld [vmem:[%s840_s4 + $0x18] sm:$0xff]  ;;  %v220_v40 = vld [vmem:[%s840_s4 + $0x10] sm:$0xff] }
  0xc1   :  { %v185_v47 = vsel %vm110_vm0, %v171_v44, 0.0  ;;  %v182_v48 = vsel %vm110_vm0, %v170_v45, 0.0  ;;  %v191_v54 = vsel %vm110_vm0, %v173_v49, 0.0  ;;  %v188_v55 = vsel %vm110_vm0, %v172_v50, 0.0 }
  0xc2   :  { %186 = vadd.xlane.f32.xlu1 %v185_v47  ;;  %183 = vadd.xlane.f32.xlu0 %v182_v48  ;;  %v197_v58 = vsel %vm110_vm0, %v175_v56, 0.0  ;;  %v194_v59 = vsel %vm110_vm0, %v174_v57, 0.0  ;;  %v203_v62 = vsel %vm110_vm0, %v177_v60, 0.0  ;;  %v200_v63 = vsel %vm110_vm0, %v176_v61, 0.0  ;;  %v223_v47 = vld [vmem:[%s840_s4 + $0x28] sm:$0xff]  ;;  %v222_v48 = vld [vmem:[%s840_s4 + $0x20] sm:$0xff] }
  0xc3   :  { %v179_v3 = vmul.f32 %v169_v53, %v159_v42  ;;  %v178_v7 = vmul.f32 %v169_v53, %v158_v43  ;;  %v181_v16 = vmul.f32 %v169_v53, %v161_v51  ;;  %v180_v17 = vmul.f32 %v169_v53, %v160_v52 }
  0xc5   :  { %v209_v10 = vsel %vm110_vm0, %v179_v3, 0.0  ;;  %v206_v11 = vsel %vm110_vm0, %v178_v7, 0.0  ;;  %v215_v22 = vsel %vm110_vm0, %v181_v16, 0.0  ;;  %v212_v23 = vsel %vm110_vm0, %v180_v17, 0.0 }
  0xc6   :  { %192 = vadd.xlane.f32.xlu1 %v191_v54  ;;  %189 = vadd.xlane.f32.xlu0 %v188_v55 }
  0xca   :  { %198 = vadd.xlane.f32.xlu1 %v197_v58  ;;  %195 = vadd.xlane.f32.xlu0 %v194_v59 }
  0xce   :  { %204 = vadd.xlane.f32.xlu1 %v203_v62  ;;  %201 = vadd.xlane.f32.xlu0 %v200_v63 }
  0xd2   :  { %210 = vadd.xlane.f32.xlu1 %v209_v10  ;;  %207 = vadd.xlane.f32.xlu0 %v206_v11 }
  0xd6   :  { %216 = vadd.xlane.f32.xlu1 %v215_v22  ;;  %213 = vadd.xlane.f32.xlu0 %v212_v23 }
 0x14f   :  { %v187_v35 = vpop.xlane.xlu1 %186  ;;  %v184_v36 = vpop.xlane.xlu0 %183 }
 0x150   :  { %v225_v37 = vadd.f32 %v219_v29, %v187_v35  ;;  %v224_v38 = vadd.f32 %v218_v34, %v184_v36 }
 0x152   :  { %v422_v41 = vmul.f32 -1.442695, %v225_v37  ;;  %v421_v42 = vmul.f32 -1.442695, %v224_v38 }
 0x153   :  { %v193_v43 = vpop.xlane.xlu1 %192  ;;  %v190_v44 = vpop.xlane.xlu0 %189 }
 0x154   :  { %436 = vpow2.f32 %v422_v41  ;;  %v227_v45 = vadd.f32 %v221_v39, %v193_v43  ;;  %v226_v46 = vadd.f32 %v220_v40, %v190_v44 }
 0x155   :  { %438 = vpow2.f32 %v421_v42 }
 0x156   :  { %v424_v49 = vmul.f32 -1.442695, %v227_v45  ;;  %v423_v50 = vmul.f32 -1.442695, %v226_v46 }
 0x157   :  { %v199_v51 = vpop.xlane.xlu1 %198  ;;  %v196_v52 = vpop.xlane.xlu0 %195 }
 0x158   :  { %440 = vpow2.f32 %v424_v49  ;;  %v229_v53 = vadd.f32 %v223_v47, %v199_v51  ;;  %v228_v54 = vadd.f32 %v222_v48, %v196_v52 }
 0x159   :  { %442 = vpow2.f32 %v423_v50 }
 0x15a   :  { %v425_v55 = vmul.f32 -1.442695, %v228_v54  ;;  %v426_v58 = vmul.f32 -1.442695, %v229_v53 }
 0x15b   :  { %v205_v56 = vpop.xlane.xlu1 %204  ;;  %v202_v57 = vpop.xlane.xlu0 %201 }
 0x15c   :  { %444 = vpow2.f32 %v425_v55  ;;  %v230_v59 = vadd.f32 %v218_v34, %v202_v57  ;;  %v231_v11 = vadd.f32 %v219_v29, %v205_v56 }
 0x15d   :  { %446 = vpow2.f32 %v426_v58 }
 0x15e   :  { %v437_v60 = vpop.eup %436  ;;  %v427_v16 = vmul.f32 -1.442695, %v230_v59  ;;  %v428_v34 = vmul.f32 -1.442695, %v231_v11 }
 0x15f   :  { %v439_v61 = vpop.eup %438  ;;  %v273_v62 = vadd.f32 1.0, %v437_v60  ;;  %v211_v63 = vpop.xlane.xlu1 %210 }
 0x160   :  { %v208_v3 = vpop.xlane.xlu0 %207  ;;  %v272_v7 = vadd.f32 1.0, %v439_v61  ;;  %v233_v10 = vadd.f32 %v221_v39, %v211_v63 }
 0x161   :  { %448 = vrcp.f32 %v273_v62  ;;  %v232_v37 = vadd.f32 %v220_v40, %v208_v3 }
 0x162   :  { %v441_v17 = vpop.eup %440  ;;  %450 = vrcp.f32 %v272_v7  ;;  %v430_v22 = vmul.f32 -1.442695, %v233_v10 }
 0x163   :  { %v443_v23 = vpop.eup %442  ;;  %v217_v28 = vpop.xlane.xlu1 %216  ;;  %v275_v41 = vadd.f32 1.0, %v441_v17  ;;  %v429_v29 = vmul.f32 -1.442695, %v232_v37 }
 0x164   :  { %v274_v35 = vadd.f32 1.0, %v443_v23  ;;  %452 = vpow2.f32 %v430_v22  ;;  %v235_v36 = vadd.f32 %v223_v47, %v217_v28  ;;  %v214_v38 = vpop.xlane.xlu0 %213 }
 0x165   :  { %454 = vpow2.f32 %v427_v16  ;;  %v234_v39 = vadd.f32 %v222_v48, %v214_v38 }
 0x166   :  { %456 = vrcp.f32 %v274_v35  ;;  %v432_v42 = vmul.f32 -1.442695, %v235_v36  ;;  %v445_v43 = vpop.eup %444 }
 0x167   :  { %v447_v44 = vpop.eup %446  ;;  %v276_v45 = vadd.f32 1.0, %v445_v43  ;;  %v431_v50 = vmul.f32 -1.442695, %v234_v39 }
 0x168   :  { %458 = vpow2.f32 %v432_v42  ;;  %v277_v40 = vadd.f32 1.0, %v447_v44 }
 0x169   :  { %460 = vpow2.f32 %v428_v34 }
 0x16a   :  { %462 = vrcp.f32 %v275_v41 }
 0x16b   :  { %v449_v46 = vpop.eup %448  ;;  %464 = vpow2.f32 %v429_v29 }
 0x16c   :  { %v451_v49 = vpop.eup %450  ;;  %315 = vperm.xlu1 %435, %v449_v46   ;;  %466 = vrcp.f32 %v276_v45 }
 0x16d   :  { %310 = vperm.xlu0 %434, %v451_v49   ;;  %468 = vpow2.f32 %v431_v50 }
 0x16e   :  { %v453_v47 = vpop.eup %452 }
 0x16f   :  { %v455_v51 = vpop.eup %454  ;;  %v281_v52 = vadd.f32 1.0, %v453_v47 }
 0x170   :  { %v457_v53 = vpop.eup %456  ;;  %v278_v54 = vadd.f32 1.0, %v455_v51 }
 0x171   :  { %470 = vrcp.f32 %v281_v52  ;;  %320 = vperm.xlu1 %435, %v457_v53  }
 0x172   :  { %v459_v48 = vpop.eup %458  ;;  %472 = vrcp.f32 %v277_v40 }
 0x173   :  { %v461_v55 = vpop.eup %460  ;;  %v283_v56 = vadd.f32 1.0, %v459_v48 }
 0x174   :  { %v463_v57 = vpop.eup %462  ;;  %v279_v58 = vadd.f32 1.0, %v461_v55 }
 0x175   :  { %474 = vrcp.f32 %v283_v56  ;;  %325 = vperm.xlu1 %435, %v463_v57   ;;  %v465_v59 = vpop.eup %464 }
 0x176   :  { %476 = vrcp.f32 %v278_v54  ;;  %v467_v60 = vpop.eup %466  ;;  %v280_v62 = vadd.f32 1.0, %v465_v59 }
 0x177   :  { %v469_v61 = vpop.eup %468  ;;  %478 = vrcp.f32 %v279_v58 }
 0x178   :  { %480 = vrcp.f32 %v280_v62  ;;  %v282_v7 = vadd.f32 1.0, %v469_v61 }
 0x179   :  { %330 = vperm.xlu1 %435, %v467_v60  }
 0x17a   :  { %482 = vrcp.f32 %v282_v7 }
 0x17b   :  { %v471_v63 = vpop.eup %470 }
 0x17c   :  { %v473_v3 = vpop.eup %472  ;;  %355 = vperm.xlu0 %434, %v471_v63  }
 0x17d   :  { %335 = vperm.xlu1 %435, %v473_v3  }
 0x17f   :  { %v475_v10 = vpop.eup %474 }
 0x180   :  { %v477_v11 = vpop.eup %476  ;;  %365 = vperm.xlu0 %434, %v475_v10  }
 0x181   :  { %340 = vperm.xlu1 %435, %v477_v11   ;;  %v479_v16 = vpop.eup %478 }
 0x182   :  { %v481_v17 = vpop.eup %480 }
 0x184   :  { %v483_v22 = vpop.eup %482 }
 0x185   :  { %345 = vperm.xlu1 %435, %v479_v16  }
 0x189   :  { %350 = vperm.xlu1 %435, %v481_v17  }
 0x18d   :  { %360 = vperm.xlu1 %435, %v483_v22  }
 0x1eb   :  { %v316_v23 = vpop.permute.xlu1 %315 }
 0x1ec   :  { %v370_v28 = vmul.f32 %v316_v23, %v540_v5  ;;  %v371_v35 = vmul.f32 %v316_v23, %v545_v6  ;;  %v311_v36 = vpop.permute.xlu0 %310 }
 0x1ed   :  { %v368_v34 = vmul.f32 %v311_v36, %v518_v0  ;;  %v369_v37 = vmul.f32 %v311_v36, %v523_v1 }
 0x1ee   :  { %394 = vst [vmem:[%s841_s5 + $0x10] sm:$0xff] %v370_v28  ;;  %395 = vst [vmem:[%s841_s5 + $0x18] sm:$0xff] %v371_v35 }
 0x1ef   :  { %392 = vst [vmem:[%s841_s5] sm:$0xff] %v368_v34  ;;  %393 = vst [vmem:[%s841_s5 + $0x8] sm:$0xff] %v369_v37 }
 0x1f0   :  { %v321_v5 = vpop.permute.xlu1 %320 }
 0x1f1   :  { %v372_v0 = vmul.f32 %v321_v5, %v566_v12  ;;  %v373_v1 = vmul.f32 %v321_v5, %v571_v13 }
 0x1f3   :  { %396 = vst [vmem:[%s841_s5 + $0x20] sm:$0xff] %v372_v0  ;;  %397 = vst [vmem:[%s841_s5 + $0x28] sm:$0xff] %v373_v1 }
 0x1f4   :  { %v326_v6 = vpop.permute.xlu1 %325 }
 0x1f5   :  { %v374_v38 = vmul.f32 %v326_v6, %v590_v18  ;;  %v375_v41 = vmul.f32 %v326_v6, %v595_v19 }
 0x1f7   :  { %398 = vst [vmem:[%s841_s5 + $0x30] sm:$0xff] %v374_v38  ;;  %399 = vst [vmem:[%s841_s5 + $0x38] sm:$0xff] %v375_v41 }
 0x1f8   :  { %v331_v12 = vpop.permute.xlu1 %330 }
 0x1f9   :  { %v376_v13 = vmul.f32 %v331_v12, %v614_v24  ;;  %v377_v42 = vmul.f32 %v331_v12, %v619_v25 }
 0x1fb   :  { %400 = vst [vmem:[%s841_s5 + $0x40] sm:$0xff] %v376_v13  ;;  %401 = vst [vmem:[%s841_s5 + $0x48] sm:$0xff] %v377_v42  ;;  %v356_v18 = vpop.permute.xlu0 %355 }
 0x1fc   :  { %v336_v19 = vpop.permute.xlu1 %335  ;;  %v386_v43 = vmul.f32 %v356_v18, %v600_v20  ;;  %v387_v39 = vmul.f32 %v356_v18, %v605_v21 }
 0x1fd   :  { %v378_v29 = vmul.f32 %v336_v19, %v638_v30  ;;  %v379_v24 = vmul.f32 %v336_v19, %v643_v31 }
 0x1fe   :  { %410 = vst [vmem:[%s841_s5 + $0x90] sm:$0xff] %v386_v43  ;;  %411 = vst [vmem:[%s841_s5 + $0x98] sm:$0xff] %v387_v39 }
 0x1ff   :  { %402 = vst [vmem:[%s841_s5 + $0x50] sm:$0xff] %v378_v29  ;;  %403 = vst [vmem:[%s841_s5 + $0x58] sm:$0xff] %v379_v24  ;;  %v366_v20 = vpop.permute.xlu0 %365 }
 0x200   :  { %v341_v21 = vpop.permute.xlu1 %340  ;;  %v390_v25 = vmul.f32 %v366_v20, %v648_v32  ;;  %v391_v30 = vmul.f32 %v366_v20, %v653_v33 }
 0x201   :  { %v380_v31 = vmul.f32 %v341_v21, %v528_v2  ;;  %v381_v44 = vmul.f32 %v341_v21, %v535_v4 }
 0x202   :  { %414 = vst [vmem:[%s841_s5 + $0xb0] sm:$0xff] %v390_v25  ;;  %415 = vst [vmem:[%s841_s5 + $0xb8] sm:$0xff] %v391_v30 }
 0x203   :  { %404 = vst [vmem:[%s841_s5 + $0x60] sm:$0xff] %v380_v31  ;;  %405 = vst [vmem:[%s841_s5 + $0x68] sm:$0xff] %v381_v44 }
 0x204   :  { %v346_v32 = vpop.permute.xlu1 %345 }
 0x205   :  { %v382_v2 = vmul.f32 %v346_v32, %v552_v8  ;;  %v383_v4 = vmul.f32 %v346_v32, %v557_v9 }
 0x207   :  { %406 = vst [vmem:[%s841_s5 + $0x70] sm:$0xff] %v382_v2  ;;  %407 = vst [vmem:[%s841_s5 + $0x78] sm:$0xff] %v383_v4 }
 0x208   :  { %v351_v33 = vpop.permute.xlu1 %350 }
 0x209   :  { %v384_v45 = vmul.f32 %v351_v33, %v576_v14  ;;  %v385_v46 = vmul.f32 %v351_v33, %v581_v15 }
 0x20b   :  { %408 = vst [vmem:[%s841_s5 + $0x80] sm:$0xff] %v384_v45  ;;  %409 = vst [vmem:[%s841_s5 + $0x88] sm:$0xff] %v385_v46 }
 0x20c   :  { %v361_v8 = vpop.permute.xlu1 %360 }
 0x20d   :  { %v388_v9 = vmul.f32 %v361_v8, %v624_v26  ;;  %v389_v49 = vmul.f32 %v361_v8, %v629_v27 }
 0x20f   :  { %412 = vst [vmem:[%s841_s5 + $0xa0] sm:$0xff] %v388_v9  ;;  %413 = vst [vmem:[%s841_s5 + $0xa8] sm:$0xff] %v389_v49 }

</bundles_post_ra>
